<compile_context>
chip_gen: v7x
topology: tpu7x:2x2x1
jax: 0.10.0
libtpu: 0.0.40
codegen_flags: <defaults>
</compile_context>

<pallas_src>
import jax
import jax.numpy as jnp
from jax.experimental import pallas as pl
from jax.experimental.pallas import tpu as pltpu

# Target bytes of the x tile per grid step (HBM-bandwidth-bound op: big tiles
# amortize the ~0.35 us per-step overhead; 2 MiB * ~4 live buffers ~= 8 MiB,
# safe on every TPU generation's default scoped VMEM).
_BLOCK_BUDGET_BYTES = 2 * 1024 * 1024
_VMEM_LIMIT_BYTES = 32 * 1024 * 1024  # headroom; <= v7x's 64 MiB physical VMEM


def _sublane_multiple(itemsize: int) -> int:
    # f32 -> 8, bf16/f16 -> 16, int8/fp8 -> 32 (native packed sublane tile).
    return max(8, 32 // itemsize)


def _pick_lane_tile(hw: int, itemsize: int, sublane_mult: int) -> int:
    """Largest multiple of 128 dividing hw that keeps a sublane_mult-row block
    within the byte budget; falls back to the full lane dim (always legal)."""
    max_lanes = _BLOCK_BUDGET_BYTES // (sublane_mult * itemsize)
    if hw <= max_lanes or hw % 128 != 0:
        return hw
    t = (max_lanes // 128) * 128
    while t >= 128:
        if hw % t == 0:
            return t
        t -= 128
    return hw


def _pick_row_tile(r: int, lane_tile: int, itemsize: int, sublane_mult: int) -> int:
    """Largest multiple of sublane_mult dividing r that fits the byte budget;
    falls back to the full row dim (always legal)."""
    if r * lane_tile * itemsize <= _BLOCK_BUDGET_BYTES:
        return r
    max_rows = max(_BLOCK_BUDGET_BYTES // (lane_tile * itemsize), 1)
    t = (max_rows // sublane_mult) * sublane_mult
    while t >= sublane_mult:
        if r % t == 0:
            return t
        t -= sublane_mult
    return r


def _make_preprocess_kernel(row_tile: int):
    def kernel(x_ref, mean_ref, inv_std_ref, o_ref):
        # x_ref:       (row_tile, lane_tile) tile of flattened image rows
        # mean_ref:    (R, 1) f32, VMEM-resident across the whole grid
        # inv_std_ref: (R, 1) f32, VMEM-resident across the whole grid
        r0 = pl.multiple_of(pl.program_id(0) * row_tile, row_tile)
        m = mean_ref[pl.ds(r0, row_tile), :]
        s_inv = inv_std_ref[pl.ds(r0, row_tile), :]
        x = x_ref[...].astype(jnp.float32)
        o_ref[...] = ((x - m) * s_inv).astype(o_ref.dtype)

    return kernel


def preprocess(x, mean, std):
    """(x - mean) / std with per-channel mean/std, NCHW input."""
    N, C, H, W = x.shape
    HW = H * W
    R = N * C

    itemsize = jnp.dtype(x.dtype).itemsize
    sublane_mult = _sublane_multiple(itemsize)
    lane_tile = _pick_lane_tile(HW, itemsize, sublane_mult)
    row_tile = _pick_row_tile(R, lane_tile, itemsize, sublane_mult)

    # Glue: flatten NCHW -> (N*C, H*W); expand per-channel stats to per-row
    # f32 columns (division pre-folded into a reciprocal, computed in f32).
    x2 = x.reshape(R, HW)
    mean_rows = jnp.tile(mean.astype(jnp.float32), N).reshape(R, 1)
    inv_std_rows = jnp.tile(1.0 / std.astype(jnp.float32), N).reshape(R, 1)

    grid = (R // row_tile, HW // lane_tile)

    out2 = pl.pallas_call(
        _make_preprocess_kernel(row_tile),
        out_shape=jax.ShapeDtypeStruct((R, HW), x.dtype),
        grid_spec=pltpu.PrefetchScalarGridSpec(
            num_scalar_prefetch=0,
            grid=grid,
            in_specs=[
                pl.BlockSpec((row_tile, lane_tile), lambda i, j: (i, j)),
                # Stats stay resident in VMEM: same block index every step,
                # so no per-step DMA for these tiny buffers.
                pl.BlockSpec((R, 1), lambda i, j: (0, 0)),
                pl.BlockSpec((R, 1), lambda i, j: (0, 0)),
            ],
            out_specs=pl.BlockSpec((row_tile, lane_tile), lambda i, j: (i, j)),
        ),
        compiler_params=pltpu.CompilerParams(
            dimension_semantics=("parallel", "parallel"),
            vmem_limit_bytes=_VMEM_LIMIT_BYTES,
        ),
    )(x2, mean_rows, inv_std_rows)

    return out2.reshape(N, C, H, W)


if __name__ == "__main__":
    key = jax.random.PRNGKey(0)
    kx, km, ks = jax.random.split(key, 3)

    N, C, H, W = 2, 4, 16, 16
    x = jax.random.normal(kx, (N, C, H, W), dtype=jnp.float32)

    # Deterministic per-channel "dataset statistics" (synthetic, in-script).
    mean = jax.random.uniform(km, (C,), dtype=jnp.float32, minval=-0.5, maxval=0.5)
    std = jax.random.uniform(ks, (C,), dtype=jnp.float32, minval=0.5, maxval=1.5)

    out = preprocess(x, mean, std)
    out = jax.block_until_ready(out)

    # Reference check against plain JAX broadcasting (same semantics as PyTorch
    # broadcasting of mean/std shaped (C,1,1) over NCHW).
    ref = (x - mean.reshape(1, C, 1, 1)) / std.reshape(1, C, 1, 1)
    assert out.shape == (N, C, H, W)
    assert jnp.allclose(out, ref, atol=1e-5, rtol=1e-5)

    print("KERNEL_OK")
</pallas_src>

<mosaic_0001>
module attributes {stable_mosaic.version = 11 : i64} {
  func.func @kernel(%arg0: i32, %arg1: i32, %arg2: memref<8x256xf32, #tpu.memory_space<vmem>>, %arg3: memref<8x1xf32, #tpu.memory_space<vmem>>, %arg4: memref<8x1xf32, #tpu.memory_space<vmem>>, %arg5: memref<8x256xf32, #tpu.memory_space<vmem>>) attributes {dimension_semantics = [#tpu.dimension_semantics<parallel>, #tpu.dimension_semantics<parallel>], iteration_bounds = array<i64: 1, 1>, scalar_prefetch = 0 : i64, scratch_operands = 0 : i64, tpu.core_type = #tpu.core_type<tc>, window_params = [{transform_indices = @transform_0, window_bounds = array<i64: 8, 256>}, {pipeline_mode = #tpu.pipeline_mode<synchronous>, transform_indices = @transform_1, window_bounds = array<i64: 8, 1>}, {pipeline_mode = #tpu.pipeline_mode<synchronous>, transform_indices = @transform_2, window_bounds = array<i64: 8, 1>}, {transform_indices = @transform_3, window_bounds = array<i64: 8, 256>}]} {
    %c8_i32 = arith.constant 8 : i32
    %0 = arith.muli %arg0, %c8_i32 : i32
    %1 = tpu.assume_multiple %0, 8 : i32
    %2 = arith.index_cast %1 : i32 to index
    %c0 = arith.constant 0 : index
    %3 = vector.load %arg3[%2, %c0] : memref<8x1xf32, #tpu.memory_space<vmem>>, vector<8x1xf32>
    %4 = arith.index_cast %1 : i32 to index
    %c0_0 = arith.constant 0 : index
    %5 = vector.load %arg4[%4, %c0_0] : memref<8x1xf32, #tpu.memory_space<vmem>>, vector<8x1xf32>
    %c0_1 = arith.constant 0 : index
    %c0_2 = arith.constant 0 : index
    %6 = vector.load %arg2[%c0_1, %c0_2] : memref<8x256xf32, #tpu.memory_space<vmem>>, vector<8x256xf32>
    %7 = vector.broadcast %3 : vector<8x1xf32> to vector<8x256xf32>
    %8 = arith.subf %6, %7 : vector<8x256xf32>
    %9 = vector.broadcast %5 : vector<8x1xf32> to vector<8x256xf32>
    %10 = arith.mulf %8, %9 : vector<8x256xf32>
    %c0_3 = arith.constant 0 : index
    %c0_4 = arith.constant 0 : index
    %11 = vector.load %arg5[%c0_3, %c0_4] : memref<8x256xf32, #tpu.memory_space<vmem>>, vector<8x256xf32>
    tpu.vector_store %arg5[%c0_3, %c0_4], %10 {strides = array<i32>} : memref<8x256xf32, #tpu.memory_space<vmem>>, vector<8x256xf32>,
    return
  }
  func.func @transform_0(%arg0: i32, %arg1: i32) -> (i32, i32) {
    %c0_i32 = arith.constant 0 : i32
    return %arg0, %arg1 : i32, i32
  }
  func.func @transform_1(%arg0: i32, %arg1: i32) -> (i32, i32) {
    %c0_i32 = arith.constant 0 : i32
    %c0_i32_0 = arith.constant 0 : i32
    %c0_i32_1 = arith.constant 0 : i32
    return %c0_i32, %c0_i32_0 : i32, i32
  }
  func.func @transform_2(%arg0: i32, %arg1: i32) -> (i32, i32) {
    %c0_i32 = arith.constant 0 : i32
    %c0_i32_0 = arith.constant 0 : i32
    %c0_i32_1 = arith.constant 0 : i32
    return %c0_i32, %c0_i32_0 : i32, i32
  }
  func.func @transform_3(%arg0: i32, %arg1: i32) -> (i32, i32) {
    %c0_i32 = arith.constant 0 : i32
    return %arg0, %arg1 : i32, i32
  }
}

</mosaic_0001>

<bundles_post_ra>
// kernel: tpu_custom_call.1
= control target key start
LH: loop header
LB: loop body
LE: loop exit
PB: predicated region body
PF: predicated region fallthrough
CT: control target
= control target key end

     0   :  { %v79_v1 = vmov 0   ;;  %s125_s0 = inlined_call_operand.vmem [shape: f32[8,256], index: 0, kind: input, shape index: {}]   ;;  %s126_s1 = inlined_call_operand.vmem [shape: f32[8,1], index: 1, kind: input, shape index: {}]   ;;  %s127_s2 = inlined_call_operand.vmem [shape: f32[8,1], index: 2, kind: input, shape index: {}]   ;;  %s128_s3 = inlined_call_operand.hbm [shape: f32[8,256], index: 3, kind: output, shape index: {}]  }
   0x1   :  { %v17_v0 = vld [vmem:[%s126_s1] sm:$0xff]  ;;  %54 = vset.pattern.permute.xlu0 %v79_v1 }
   0x2   :  { %8 = vsyncpa [#allocation3], 0  ;;  %24 = vperm.xlu0 %54, %v17_v0   ;;  %v19_v2 = vld [vmem:[%s127_s2] sm:$0xff]  ;;  %v21_v4 = vld [vmem:[%s125_s0 + $0x8] sm:$0xff]  ;;  %s80_s20 = smov [#allocation2]  }
   0x3   :  { %v20_v3 = vld [vmem:[%s125_s0] sm:$0xff]  ;;  %s44_s1 = sshll.u32 %s80_s20, 4  ;;  %s45_s1 = int_to_ptr.vmem [resolvable:$true] %s44_s1 }
   0x4   :  { %s55_s2 = scalar_lea.vmem %s45_s1, 256  ;;  %p60_p1 = scmp.lt.s32.totalorder %s45_s1, %s45_s1 }
   0x5   :  { %p56_p0 = scmp.ne.s32.totalorder %s45_s1, %s55_s2  ;;  %p61_p2 = scmp.lt.s32.totalorder %s55_s2, %s55_s2 }
   0x6   :  { %31 = vperm.xlu0 %54, %v19_v2  }
   0x7   :  { %p62_p3 = por %p61_p2, %p60_p1 }
   0x9   :  { %p63_p4 = pnand %p62_p3, %p56_p0 }
  0x81   :  { %v25_v5 = vpop.permute.xlu0 %24 }
  0x82   :  { %v27_v6 = vsub.f32 %v20_v3, %v25_v5  ;;  %v28_v7 = vsub.f32 %v21_v4, %v25_v5 }
  0x85   :  { %v32_v8 = vpop.permute.xlu0 %31 }
  0x86   :  { %v34_v9 = vmul.f32 %v32_v8, %v27_v6  ;;  %v35_v10 = vmul.f32 %v32_v8, %v28_v7 }
  0x88   :  { %36 = vst [vmem:[#allocation2] sm:$0xff] %v34_v9  ;;  %37 = vst [vmem:[#allocation2 + $0x8] sm:$0xff] %v35_v10 }
  0x89   :  { %66 = shalt.err (!%p63_p4)
}
  0x8a   :  { %s67_s22 = scalar_lea.hbm %s128_s3, 256 }
  0x8b   :  { %p68_p5 = scmp.ne.s32.totalorder %s128_s3, %s67_s22  ;;  %p71_p6 = scmp.lt.u32.totalorder %s67_s22, %s128_s3 }
  0x8d   :  { %p73_p7 = pnand %p71_p6, %p68_p5 }
  0x8f   :  { %76 = shalt.err (!%p73_p7)
}
  0x90   :  { %47 = dma.vmem_to_hbm [thread:$0]  %s45_s1, 256, %s128_s3, [#allocation3]  }
  0x91   :  { %77 = dma.done.wait [#allocation3], 256  }
  0x92   :  { %78 = vsyncadd [#allocation3], 4294967040 }
  0x93   :  { %51 = vsyncpa [#allocation3], 1 }

</bundles_post_ra>
